<compile_context>
chip_gen: v6e
topology: v6e:2x2x1
jax: 0.10.0
libtpu: 0.0.40
codegen_flags: <defaults>
</compile_context>

<pallas_src>
import math
import jax
import jax.numpy as jnp
from jax import lax
from jax.experimental import pallas as pl
from jax.experimental.pallas import tpu as pltpu

TEMPERATURE = 0.1
EPS = 1e-6
NORM_EPS = 1e-12        # torch F.normalize default eps

S_LEN = 60              # dense1: Linear(60, 1)
F_IN = 128              # dense2: Linear(128, 768)
H_OUT = 768


# ---------------------------------------------------------------------------
# Single fused kernel: project -> normalize -> stack -> NT-Xent loss
# ---------------------------------------------------------------------------
def _ntxent_fused_kernel(x1_ref, x2_ref, w1_ref, w2_ref, b2_ref, b1_ref,
                         loss_ref, out_sc):
    inv_t = 1.0 / TEMPERATURE
    b = x1_ref.shape[0]
    two_b = 2 * b

    w1 = w1_ref[...]                                     # (1, S, 1) f32
    w2 = w2_ref[...]                                     # (F, H)   bf16

    # dense2/dense1 fused bias: (sum_s w1[s]) * b2 + b1  (exact algebra).
    sw = jnp.sum(w1, axis=1)                             # (1, 1)
    bias = sw * b2_ref[...] + b1_ref[0, 0]               # (1, H) f32

    def project(x):
        # dense1's weight contracted over S BEFORE dense2 (identical result).
        xr = jnp.sum(x * w1, axis=1)                     # (B, F) f32
        # MXU in bf16, f32 accumulation.
        z = jnp.dot(xr.astype(jnp.bfloat16), w2,
                    preferred_element_type=jnp.float32) + bias     # (B, H)
        # F.normalize(dim=-1) via rsqrt (EUP slot).
        ss = jnp.sum(z * z, axis=-1, keepdims=True)
        return z * lax.rsqrt(jnp.maximum(ss, NORM_EPS * NORM_EPS))

    o1 = project(x1_ref[...])                            # (B, H) f32, unit rows
    o2 = project(x2_ref[...])                            # (B, H) f32, unit rows

    # Stack the normalized features in VMEM scratch (no wrapper-side concat,
    # no extra HBM round trip).
    out_sc[0:b, :] = o1
    out_sc[b:two_b, :] = o2
    outb = out_sc[...].astype(jnp.bfloat16)              # bf16 Gram operands

    # One Gram matmul on the stacked features: out @ out.T (f32 accumulate).
    g = lax.dot_general(outb, outb, (((1,), (1,)), ((), ())),
                        preferred_element_type=jnp.float32)        # (2B, 2B)

    # Negatives: mask the self-similarity diagonal before the exp-sum instead
    # of subtracting e^(1/T) afterwards (no catastrophic cancellation).
    rows = lax.broadcasted_iota(jnp.int32, (two_b, two_b), 0)
    cols = lax.broadcasted_iota(jnp.int32, (two_b, two_b), 1)
    e = jnp.where(rows == cols, 0.0, jnp.exp(g * inv_t))
    neg = jnp.maximum(jnp.sum(e, axis=-1, keepdims=True), EPS)     # (2B, 1)

    # Positive term straight from the two normalized halves (no Gram masking).
    pos = jnp.sum(o1 * o2, axis=-1, keepdims=True)                 # (B, 1)

    # mean_i [ log(neg_i + eps) - pos_i / T ] ; pos repeats once per half.
    neg_term = jnp.sum(jnp.log(neg + EPS), axis=0, keepdims=True)  # (1, 1)
    pos_term = jnp.sum(pos, axis=0, keepdims=True)                 # (1, 1)
    loss = (neg_term - 2.0 * inv_t * pos_term) * (1.0 / two_b)     # (1, 1)
    loss_ref[0, 0] = loss[0, 0]


def ntxent_forward(vgg_features, pos_vgg_features, params):
    """vgg_features / pos_vgg_features: (B, S=60, F=128) float32."""
    w2, b2, w1, b1 = params            # (F,H), (H,), (S,), ()
    B, S, F = vgg_features.shape
    assert S == S_LEN and F == F_IN
    H = w2.shape[1]

    # Param-side plumbing only (tiny / metadata); nothing touches the big
    # (B, S, F) activations on the wrapper side.
    w2_bf16 = w2.astype(jnp.bfloat16)                    # (F, H) bf16 MXU operand
    w1_3d = w1.astype(jnp.float32).reshape(1, S, 1)
    b2_2d = b2.astype(jnp.float32).reshape(1, H)
    b1_2d = jnp.asarray(b1, jnp.float32).reshape(1, 1)

    vmem = pltpu.MemorySpace.VMEM
    smem = pltpu.MemorySpace.SMEM
    loss = pl.pallas_call(
        _ntxent_fused_kernel,
        out_shape=jax.ShapeDtypeStruct((1, 1), jnp.float32),
        in_specs=[
            pl.BlockSpec(memory_space=vmem),   # x1   (B, S, F) f32
            pl.BlockSpec(memory_space=vmem),   # x2   (B, S, F) f32
            pl.BlockSpec(memory_space=vmem),   # w1   (1, S, 1) f32
            pl.BlockSpec(memory_space=vmem),   # W2   (F, H)    bf16
            pl.BlockSpec(memory_space=vmem),   # b2   (1, H)    f32
            pl.BlockSpec(memory_space=smem),   # b1   (1, 1)    f32 scalar
        ],
        out_specs=pl.BlockSpec(memory_space=smem),       # (1, 1) scalar loss
        scratch_shapes=[pltpu.VMEM((2 * B, H), jnp.float32)],
    )(vgg_features, pos_vgg_features, w1_3d, w2_bf16, b2_2d, b1_2d)
    return loss[0, 0]


# ---------------------------------------------------------------------------
# Pure-JAX f32 reference (mirrors the PyTorch forward exactly)
# ---------------------------------------------------------------------------
def ntxent_reference(x1, x2, params):
    w2, b2, w1, b1 = params

    def proj(x):
        y = x @ w2 + b2                                   # (B,S,H)
        y = jnp.swapaxes(y, 1, 2)                         # (B,H,S)
        z = jnp.squeeze(y @ w1[:, None] + b1, -1)         # (B,H)
        n = jnp.linalg.norm(z, axis=-1, keepdims=True)
        return z / jnp.maximum(n, NORM_EPS)

    o1, o2 = proj(x1), proj(x2)
    out = jnp.concatenate([o1, o2], axis=0)
    neg = jnp.exp(out @ out.T / TEMPERATURE).sum(-1)
    neg = jnp.maximum(neg - math.e ** (1.0 / TEMPERATURE), EPS)
    pos = jnp.exp(jnp.sum(o1 * o2, -1) / TEMPERATURE)
    pos = jnp.concatenate([pos, pos], axis=0)
    return jnp.mean(-jnp.log(pos / (neg + EPS)))


if __name__ == "__main__":
    B = 2
    key = jax.random.PRNGKey(0)
    k1, k2, k3, k4, k5, k6 = jax.random.split(key, 6)

    # Deterministic parameter init (PyTorch Linear-style uniform ranges).
    bound2 = 1.0 / math.sqrt(F_IN)
    bound1 = 1.0 / math.sqrt(S_LEN)
    w2 = jax.random.uniform(k1, (F_IN, H_OUT), jnp.float32, -bound2, bound2)  # dense2.weight.T
    b2 = jax.random.uniform(k2, (H_OUT,), jnp.float32, -bound2, bound2)
    w1 = jax.random.uniform(k3, (S_LEN,), jnp.float32, -bound1, bound1)       # dense1.weight[0]
    b1 = jax.random.uniform(k4, (), jnp.float32, -bound1, bound1)
    params = (w2, b2, w1, b1)

    vgg_features = jax.random.normal(k5, (B, S_LEN, F_IN), jnp.float32)
    pos_vgg_features = jax.random.normal(k6, (B, S_LEN, F_IN), jnp.float32)

    loss = jax.block_until_ready(
        ntxent_forward(vgg_features, pos_vgg_features, params))
    ref = jax.block_until_ready(
        ntxent_reference(vgg_features, pos_vgg_features, params))

    assert jnp.isfinite(loss), "loss is not finite"
    # Tolerance sized for the intentional deviations: diagonal-mask vs
    # e^(1/T)-subtract is ~1e-5 relative; the bf16 MXU operands (f32 accum)
    # perturb the cosine similarities by ~1e-3, i.e. ~1e-2 on sim/T terms.
    assert jnp.allclose(loss, ref, rtol=2e-2, atol=1e-2), (loss, ref)
    print("KERNEL_OK")
</pallas_src>

<mosaic_0001>
module attributes {stable_mosaic.version = 11 : i64} {
  func.func @_ntxent_fused_kernel(%arg0: memref<2x60x128xf32, #tpu.memory_space<vmem>>, %arg1: memref<2x60x128xf32, #tpu.memory_space<vmem>>, %arg2: memref<1x60x1xf32, #tpu.memory_space<vmem>>, %arg3: memref<128x768xbf16, #tpu.memory_space<vmem>>, %arg4: memref<1x768xf32, #tpu.memory_space<vmem>>, %arg5: memref<1x1xf32, #tpu.memory_space<smem>>, %arg6: memref<1x1xf32, #tpu.memory_space<smem>>, %arg7: memref<4x768xf32, #tpu.memory_space<vmem>>) attributes {dimension_semantics = [], scalar_prefetch = 0 : i64, scratch_operands = 1 : i64, tpu.core_type = #tpu.core_type<tc>} {
    %c0 = arith.constant 0 : index
    %c0_0 = arith.constant 0 : index
    %c0_1 = arith.constant 0 : index
    %0 = vector.load %arg2[%c0, %c0_0, %c0_1] : memref<1x60x1xf32, #tpu.memory_space<vmem>>, vector<1x60x1xf32>
    %c0_2 = arith.constant 0 : index
    %c0_3 = arith.constant 0 : index
    %1 = vector.load %arg3[%c0_2, %c0_3] : memref<128x768xbf16, #tpu.memory_space<vmem>>, vector<128x768xbf16>
    %cst = arith.constant dense<0.000000e+00> : vector<1x1xf32>
    %2 = vector.multi_reduction <add>, %0, %cst [1] : vector<1x60x1xf32> to vector<1x1xf32>
    %c0_4 = arith.constant 0 : index
    %c0_5 = arith.constant 0 : index
    %3 = vector.load %arg4[%c0_4, %c0_5] : memref<1x768xf32, #tpu.memory_space<vmem>>, vector<1x768xf32>
    %4 = vector.broadcast %2 : vector<1x1xf32> to vector<1x768xf32>
    %5 = arith.mulf %4, %3 : vector<1x768xf32>
    %c0_6 = arith.constant 0 : index
    %c0_7 = arith.constant 0 : index
    %6 = memref.load %arg5[%c0_6, %c0_7] : memref<1x1xf32, #tpu.memory_space<smem>>
    %7 = vector.broadcast %6 : f32 to vector<1x768xf32>
    %8 = arith.addf %5, %7 : vector<1x768xf32>
    %c0_8 = arith.constant 0 : index
    %c0_9 = arith.constant 0 : index
    %c0_10 = arith.constant 0 : index
    %9 = vector.load %arg0[%c0_8, %c0_9, %c0_10] : memref<2x60x128xf32, #tpu.memory_space<vmem>>, vector<2x60x128xf32>
    %10 = vector.broadcast %0 : vector<1x60x1xf32> to vector<2x60x128xf32>
    %11 = arith.mulf %9, %10 : vector<2x60x128xf32>
    %cst_11 = arith.constant dense<0.000000e+00> : vector<2x128xf32>
    %12 = vector.multi_reduction <add>, %11, %cst_11 [1] : vector<2x60x128xf32> to vector<2x128xf32>
    %13 = arith.truncf %12 : vector<2x128xf32> to vector<2x128xbf16>
    %cst_12 = arith.constant dense<0.000000e+00> : vector<2x768xf32>
    %14 = tpu.matmul %13, %1, %cst_12 {dimension_numbers = #tpu.dot_dimension_numbers<[1], [0], [0], [1], [0, 0, 1, 1], [], []>} : vector<2x128xbf16>, vector<128x768xbf16>, vector<2x768xf32> -> vector<2x768xf32>
    %15 = vector.broadcast %8 : vector<1x768xf32> to vector<2x768xf32>
    %16 = arith.addf %14, %15 : vector<2x768xf32>
    %17 = arith.mulf %16, %16 : vector<2x768xf32>
    %cst_13 = arith.constant dense<0.000000e+00> : vector<2xf32>
    %18 = vector.multi_reduction <add>, %17, %cst_13 [1] : vector<2x768xf32> to vector<2xf32>
    %19 = vector.shape_cast %18 : vector<2xf32> to vector<2x1xf32>
    %cst_14 = arith.constant 1.000000e-24 : f32
    %20 = vector.broadcast %cst_14 : f32 to vector<2x1xf32>
    %21 = arith.maximumf %19, %20 : vector<2x1xf32>
    %22 = math.rsqrt %21 : vector<2x1xf32>
    %23 = vector.broadcast %22 : vector<2x1xf32> to vector<2x768xf32>
    %24 = arith.mulf %16, %23 : vector<2x768xf32>
    %c0_15 = arith.constant 0 : index
    %c0_16 = arith.constant 0 : index
    %c0_17 = arith.constant 0 : index
    %25 = vector.load %arg1[%c0_15, %c0_16, %c0_17] : memref<2x60x128xf32, #tpu.memory_space<vmem>>, vector<2x60x128xf32>
    %26 = vector.broadcast %0 : vector<1x60x1xf32> to vector<2x60x128xf32>
    %27 = arith.mulf %25, %26 : vector<2x60x128xf32>
    %cst_18 = arith.constant dense<0.000000e+00> : vector<2x128xf32>
    %28 = vector.multi_reduction <add>, %27, %cst_18 [1] : vector<2x60x128xf32> to vector<2x128xf32>
    %29 = arith.truncf %28 : vector<2x128xf32> to vector<2x128xbf16>
    %cst_19 = arith.constant dense<0.000000e+00> : vector<2x768xf32>
    %30 = tpu.matmul %29, %1, %cst_19 {dimension_numbers = #tpu.dot_dimension_numbers<[1], [0], [0], [1], [0, 0, 1, 1], [], []>} : vector<2x128xbf16>, vector<128x768xbf16>, vector<2x768xf32> -> vector<2x768xf32>
    %31 = vector.broadcast %8 : vector<1x768xf32> to vector<2x768xf32>
    %32 = arith.addf %30, %31 : vector<2x768xf32>
    %33 = arith.mulf %32, %32 : vector<2x768xf32>
    %cst_20 = arith.constant dense<0.000000e+00> : vector<2xf32>
    %34 = vector.multi_reduction <add>, %33, %cst_20 [1] : vector<2x768xf32> to vector<2xf32>
    %35 = vector.shape_cast %34 : vector<2xf32> to vector<2x1xf32>
    %cst_21 = arith.constant 1.000000e-24 : f32
    %36 = vector.broadcast %cst_21 : f32 to vector<2x1xf32>
    %37 = arith.maximumf %35, %36 : vector<2x1xf32>
    %38 = math.rsqrt %37 : vector<2x1xf32>
    %39 = vector.broadcast %38 : vector<2x1xf32> to vector<2x768xf32>
    %40 = arith.mulf %32, %39 : vector<2x768xf32>
    %c0_22 = arith.constant 0 : index
    %c0_23 = arith.constant 0 : index
    %41 = vector.load %arg7[%c0_22, %c0_23] : memref<4x768xf32, #tpu.memory_space<vmem>>, vector<2x768xf32>
    tpu.vector_store %arg7[%c0_22, %c0_23], %24 {strides = array<i32>} : memref<4x768xf32, #tpu.memory_space<vmem>>, vector<2x768xf32>,
    %c2 = arith.constant 2 : index
    %c0_24 = arith.constant 0 : index
    %42 = vector.load %arg7[%c2, %c0_24] : memref<4x768xf32, #tpu.memory_space<vmem>>, vector<2x768xf32>
    tpu.vector_store %arg7[%c2, %c0_24], %40 {strides = array<i32>} : memref<4x768xf32, #tpu.memory_space<vmem>>, vector<2x768xf32>,
    %c0_25 = arith.constant 0 : index
    %c0_26 = arith.constant 0 : index
    %43 = vector.load %arg7[%c0_25, %c0_26] : memref<4x768xf32, #tpu.memory_space<vmem>>, vector<4x768xf32>
    %44 = arith.truncf %43 : vector<4x768xf32> to vector<4x768xbf16>
    %cst_27 = arith.constant dense<0.000000e+00> : vector<4x4xf32>
    %45 = tpu.matmul %44, %44, %cst_27 {dimension_numbers = #tpu.dot_dimension_numbers<[1], [1], [0], [0], [0, 0, 1, 0], [], []>} : vector<4x768xbf16>, vector<4x768xbf16>, vector<4x4xf32> -> vector<4x4xf32>
    %46 = tpu.iota {dimensions = array<i32: 0>} : vector<4x4xi32>
    %47 = tpu.iota {dimensions = array<i32: 1>} : vector<4x4xi32>
    %48 = arith.cmpi eq, %46, %47 : vector<4x4xi32>
    %cst_28 = arith.constant 1.000000e+01 : f32
    %49 = vector.broadcast %cst_28 : f32 to vector<4x4xf32>
    %50 = arith.mulf %45, %49 : vector<4x4xf32>
    %51 = math.exp %50 : vector<4x4xf32>
    %cst_29 = arith.constant 0.000000e+00 : f32
    %52 = vector.broadcast %cst_29 : f32 to vector<4x4xf32>
    %53 = arith.select %48, %52, %51 : vector<4x4xi1>, vector<4x4xf32>
    %cst_30 = arith.constant dense<0.000000e+00> : vector<4xf32>
    %54 = vector.multi_reduction <add>, %53, %cst_30 [1] : vector<4x4xf32> to vector<4xf32>
    %55 = vector.shape_cast %54 : vector<4xf32> to vector<4x1xf32>
    %cst_31 = arith.constant 9.99999997E-7 : f32
    %56 = vector.broadcast %cst_31 : f32 to vector<4x1xf32>
    %57 = arith.maximumf %55, %56 : vector<4x1xf32>
    %58 = arith.mulf %24, %40 : vector<2x768xf32>
    %cst_32 = arith.constant dense<0.000000e+00> : vector<2xf32>
    %59 = vector.multi_reduction <add>, %58, %cst_32 [1] : vector<2x768xf32> to vector<2xf32>
    %60 = vector.shape_cast %59 : vector<2xf32> to vector<2x1xf32>
    %cst_33 = arith.constant 9.99999997E-7 : f32
    %61 = vector.broadcast %cst_33 : f32 to vector<4x1xf32>
    %62 = arith.addf %57, %61 : vector<4x1xf32>
    %63 = math.log %62 : vector<4x1xf32>
    %cst_34 = arith.constant dense<0.000000e+00> : vector<1xf32>
    %64 = vector.multi_reduction <add>, %63, %cst_34 [0] : vector<4x1xf32> to vector<1xf32>
    %65 = vector.shape_cast %64 : vector<1xf32> to vector<1x1xf32>
    %cst_35 = arith.constant dense<0.000000e+00> : vector<1xf32>
    %66 = vector.multi_reduction <add>, %60, %cst_35 [0] : vector<2x1xf32> to vector<1xf32>
    %67 = vector.shape_cast %66 : vector<1xf32> to vector<1x1xf32>
    %cst_36 = arith.constant 2.000000e+01 : f32
    %68 = vector.broadcast %cst_36 : f32 to vector<1x1xf32>
    %69 = arith.mulf %68, %67 : vector<1x1xf32>
    %70 = arith.subf %65, %69 : vector<1x1xf32>
    %cst_37 = arith.constant 2.500000e-01 : f32
    %71 = vector.broadcast %cst_37 : f32 to vector<1x1xf32>
    %72 = arith.mulf %70, %71 : vector<1x1xf32>
    %73 = vector.extract %72[0, 0] : f32 from vector<1x1xf32>
    %c0_38 = arith.constant 0 : index
    %c0_39 = arith.constant 0 : index
    %74 = memref.load %arg6[%c0_38, %c0_39] : memref<1x1xf32, #tpu.memory_space<smem>>
    memref.store %73, %arg6[%c0_38, %c0_39] : memref<1x1xf32, #tpu.memory_space<smem>>
    return
  }
}

</mosaic_0001>

<bundles_post_ra>
// kernel: tpu_custom_call.1
= control target key start
LH: loop header
LB: loop body
LE: loop exit
PB: predicated region body
PF: predicated region fallthrough
CT: control target
= control target key end

     0   :  { %vm82_vm0 = vcmask 7168   ;;  %v1796_v2 = vmov 0   ;;  %vm96_vm1 = vcmask 3072   ;;  %s1789_s0 = inlined_call_operand.vmem [shape: f32[2,60,128], index: 0, kind: input, shape index: {}]   ;;  %s1790_s1 = inlined_call_operand.vmem [shape: f32[2,60,128], index: 1, kind: input, shape index: {}]   ;;  %s1791_s2 = inlined_call_operand.vmem [shape: f32[1,60,1], index: 2, kind: input, shape index: {}]   ;;  %s1792_s3 = inlined_call_operand.vmem [shape: bf16[128,768], index: 3, kind: input, shape index: {}]   ;;  %s1793_s4 = inlined_call_operand.vmem [shape: f32[1,768], index: 4, kind: input, shape index: {}]   ;;  %s1794_s5 = inlined_call_operand.<no memory space> [shape: f32[1,1], index: 5, kind: input, shape index: {}]   ;;  %s1795_s6 = inlined_call_operand.hbm [shape: f32[1,1], index: 6, kind: output, shape index: {}]  }
   0x1   :  { %v28_v0 = vld [vmem:[%s1791_s2 + $0x10] sm:$0xff]  ;;  %v26_v1 = vld [vmem:[%s1791_s2] sm:$0xff]  ;;  %1160 = vset.pattern.permute.xlu1 %v1796_v2  ;;  %1159 = vset.pattern.permute.xlu0 %v1796_v2  ;;  %v29_v4 = vld [vmem:[%s1791_s2 + $0x18] sm:$0xff] }
   0x2   :  { %v83_v3 = vsel %vm82_vm0, %v26_v1, 0.0  ;;  %v27_v5 = vld [vmem:[%s1791_s2 + $0x8] sm:$0xff]  ;;  %143 = vperm.xlu1 %1160, %v28_v0   ;;  %v86_v6 = vsel %vm82_vm0, %v28_v0, 0.0  ;;  %133 = vperm.xlu0 %1159, %v26_v1   ;;  %v30_v9 = vld [vmem:[%s1791_s2 + $0x20] sm:$0xff]  ;;  %v88_v10 = vsel %vm82_vm0, %v29_v4, 0.0  ;;  %v32_v14 = vld [vmem:[%s1791_s2 + $0x30] sm:$0xff] }
   0x3   :  { %v84_v7 = vsel %vm82_vm0, %v27_v5, 0.0  ;;  %529 = vmatprep.mubr.bf16.mxu0 %v1796_v2  ;;  %570 = vmatprep.mubr.bf16.mxu1 %v1796_v2  ;;  %v31_v12 = vld [vmem:[%s1791_s2 + $0x28] sm:$0xff]  ;;  %v90_v13 = vsel %vm82_vm0, %v30_v9, 0.0  ;;  %v33_v17 = vld [vmem:[%s1791_s2 + $0x38] sm:$0xf]  ;;  %v94_v19 = vsel %vm82_vm0, %v32_v14, 0.0 }
   0x4   :  { %v85_v8 = vadd.f32 %v84_v7, %v83_v3  ;;  %v92_v16 = vsel %vm82_vm0, %v31_v12, 0.0  ;;  %v1329_v20 = vld [vmem:[%s1792_s3 + $0x154] ss:$24 sps:$4 sm:$0xff]   ;;  %v1339_v22 = vld [vmem:[%s1792_s3 + $0x150] ss:$24 sps:$4 sm:$0xff]   ;;  %v97_v25 = vsel %vm96_vm1, %v33_v17, 0.0 }
   0x5   :  { %v1334_v21 = vld [vmem:[%s1792_s3 + $0x15c] ss:$24 sps:$4 sm:$0xff]   ;;  %v1344_v23 = vld [vmem:[%s1792_s3 + $0x158] ss:$24 sps:$4 sm:$0xff]   ;;  %497 = vmatprep.subr.bf16.mxu0 %v1329_v20  ;;  %v1358_v29 = vld [vmem:[%s1792_s3 + $0x12c] ss:$24 sps:$4 sm:$0xff]  }
   0x6   :  { %v87_v11 = vadd.f32 %v86_v6, %v85_v8  ;;  %148 = vperm.xlu1 %1160, %v29_v4   ;;  %138 = vperm.xlu0 %1159, %v27_v5   ;;  %v1353_v27 = vld [vmem:[%s1792_s3 + $0x124] ss:$24 sps:$4 sm:$0xff]   ;;  %v1363_v30 = vld [vmem:[%s1792_s3 + $0x120] ss:$24 sps:$4 sm:$0xff]   ;;  %v1377_v34 = vld [vmem:[%s1792_s3 + $0xf4] ss:$24 sps:$4 sm:$0xff]  }
   0x7   :  { %538 = vmatprep.subr.bf16.mxu1 %v1334_v21  ;;  %498 = vmatpush1.bf16.msra.mxu0 %v1339_v22  ;;  %v1369_v31 = vld [vmem:[%s1792_s3 + $0x128] ss:$24 sps:$4 sm:$0xff]   ;;  %v1382_v35 = vld [vmem:[%s1792_s3 + $0xfc] ss:$24 sps:$4 sm:$0xff]   ;;  %v1393_v38 = vld [vmem:[%s1792_s3 + $0xf8] ss:$24 sps:$4 sm:$0xff]  }
   0x8   :  { %v89_v15 = vadd.f32 %v88_v10, %v87_v11  ;;  %539 = vmatpush1.bf16.msra.mxu1 %v1344_v23  ;;  %499 = vmatprep.subr.bf16.mxu0 %v1353_v27  ;;  %v1388_v37 = vld [vmem:[%s1792_s3 + $0xf0] ss:$24 sps:$4 sm:$0xff]   ;;  %v1399_v39 = vld [vmem:[%s1792_s3 + $0xc4] ss:$24 sps:$4 sm:$0xff]   ;;  %v1411_v42 = vld [vmem:[%s1792_s3 + $0xc0] ss:$24 sps:$4 sm:$0xff]  }
   0x9   :  { %540 = vmatprep.subr.bf16.mxu1 %v1358_v29  ;;  %v1406_v41 = vld [vmem:[%s1792_s3 + $0xcc] ss:$24 sps:$4 sm:$0xff]   ;;  %v1417_v43 = vld [vmem:[%s1792_s3 + $0xc8] ss:$24 sps:$4 sm:$0xff]   ;;  %v1428_v46 = vld [vmem:[%s1792_s3 + $0x9c] ss:$24 sps:$4 sm:$0xff]  }
   0xa   :  { %v91_v18 = vadd.f32 %v90_v13, %v89_v15  ;;  %158 = vperm.xlu1 %1160, %v31_v12   ;;  %153 = vperm.xlu0 %1159, %v30_v9   ;;  %v1423_v45 = vld [vmem:[%s1792_s3 + $0x94] ss:$24 sps:$4 sm:$0xff]   ;;  %v1433_v47 = vld [vmem:[%s1792_s3 + $0x90] ss:$24 sps:$4 sm:$0xff]   ;;  %v1447_v50 = vld [vmem:[%s1792_s3 + $0x64] ss:$24 sps:$4 sm:$0xff]  }
   0xb   :  { %500 = vmatpush1.bf16.msra.mxu0 %v1363_v30  ;;  %v1440_v49 = vld [vmem:[%s1792_s3 + $0x98] ss:$24 sps:$4 sm:$0xff]   ;;  %v1452_v51 = vld [vmem:[%s1792_s3 + $0x6c] ss:$24 sps:$4 sm:$0xff]   ;;  %v1464_v53 = vld [vmem:[%s1792_s3 + $0x68] ss:$24 sps:$4 sm:$0xff]  }
   0xc   :  { %v93_v24 = vadd.f32 %v92_v16, %v91_v18  ;;  %541 = vmatpush1.bf16.msra.mxu1 %v1369_v31  ;;  %501 = vmatprep.subr.bf16.mxu0 %v1377_v34  ;;  %v1457_v52 = vld [vmem:[%s1792_s3 + $0x60] ss:$24 sps:$4 sm:$0xff]   ;;  %v1471_v54 = vld [vmem:[%s1792_s3 + $0x34] ss:$24 sps:$4 sm:$0xff]   ;;  %v1481_v56 = vld [vmem:[%s1792_s3 + $0x30] ss:$24 sps:$4 sm:$0xff]  }
   0xd   :  { %542 = vmatprep.subr.bf16.mxu1 %v1382_v35  ;;  %v1476_v55 = vld [vmem:[%s1792_s3 + $0x3c] ss:$24 sps:$4 sm:$0xff]   ;;  %v1488_v57 = vld [vmem:[%s1792_s3 + $0x38] ss:$24 sps:$4 sm:$0xff]   ;;  %v1500_v59 = vld [vmem:[%s1792_s3 + $0xc] ss:$24 sps:$4 sm:$0xff]  }
   0xe   :  { %v95_v26 = vadd.f32 %v94_v19, %v93_v24  ;;  %168 = vperm.xlu1 %1160, %v33_v17   ;;  %163 = vperm.xlu0 %1159, %v32_v14   ;;  %v1495_v58 = vld [vmem:[%s1792_s3 + $0x4] ss:$24 sps:$4 sm:$0xff]   ;;  %v1505_v60 = vld [vmem:[%s1792_s3] ss:$24 sps:$4 sm:$0xff]  }
   0xf   :  { %502 = vmatpush1.bf16.msra.mxu0 %v1388_v37  ;;  %v1510_v61 = vld [vmem:[%s1792_s3 + $0x8] ss:$24 sps:$4 sm:$0xff]   ;;  %v1519_v62 = vld [vmem:[%s1792_s3 + $0x164] ss:$24 sps:$4 sm:$0xff]  }
  0x10   :  { %v98_v28 = vadd.f32 %v97_v25, %v95_v26  ;;  %543 = vmatpush1.bf16.msra.mxu1 %v1393_v38  ;;  %503 = vmatprep.subr.bf16.mxu0 %v1399_v39 }
  0x11   :  { %544 = vmatprep.subr.bf16.mxu1 %v1406_v41 }
  0x12   :  { %v99_v32 = vrot.slane %v98_v28, 4 }
  0x13   :  { %504 = vmatpush1.bf16.msra.mxu0 %v1411_v42 }
  0x14   :  { %v100_v33 = vadd.f32 %v99_v32, %v98_v28  ;;  %545 = vmatpush1.bf16.msra.mxu1 %v1417_v43  ;;  %505 = vmatprep.subr.bf16.mxu0 %v1423_v45 }
  0x15   :  { %546 = vmatprep.subr.bf16.mxu1 %v1428_v46 }
  0x16   :  { %v101_v36 = vrot.slane %v100_v33, 2 }
  0x17   :  { %506 = vmatpush1.bf16.msra.mxu0 %v1433_v47 }
  0x18   :  { %v102_v40 = vadd.f32 %v101_v36, %v100_v33  ;;  %547 = vmatpush1.bf16.msra.mxu1 %v1440_v49  ;;  %507 = vmatprep.subr.bf16.mxu0 %v1447_v50 }
  0x19   :  { %548 = vmatprep.subr.bf16.mxu1 %v1452_v51 }
  0x1a   :  { %v103_v44 = vrot.slane %v102_v40, 1 }
  0x1b   :  { %508 = vmatpush1.bf16.msra.mxu0 %v1457_v52 }
  0x1c   :  { %v104_v48 = vadd.f32 %v103_v44, %v102_v40  ;;  %549 = vmatpush1.bf16.msra.mxu1 %v1464_v53  ;;  %509 = vmatprep.subr.bf16.mxu0 %v1471_v54 }
  0x1d   :  { %550 = vmatprep.subr.bf16.mxu1 %v1476_v55 }
  0x1e   :  { %108 = vperm.xlu0 %1159, %v104_v48  }
  0x1f   :  { %510 = vmatpush1.bf16.msra.mxu0 %v1481_v56 }
  0x20   :  { %551 = vmatpush1.bf16.msra.mxu1 %v1488_v57  ;;  %511 = vmatprep.subr.bf16.mxu0 %v1495_v58 }
  0x21   :  { %552 = vmatprep.subr.bf16.mxu1 %v1500_v59 }
  0x22   :  { %12 = vsyncpa [#allocation5], 0  ;;  %v115_v1 = vld [vmem:[%s1789_s0] sm:$0xff]  ;;  %v116_v4 = vld [vmem:[%s1789_s0 + $0x8] sm:$0xff]  ;;  %vm193_vm2 = vcmask 1043456   ;;  %vm253_vm3 = vcmask 1041409  }
  0x23   :  { %512 = vmatpush1.bf16.msra.mxu0 %v1505_v60  ;;  %v123_v3 = vld [vmem:[%s1789_s0 + $0x40] sm:$0xff]  ;;  %v124_v5 = vld [vmem:[%s1789_s0 + $0x48] sm:$0xff]  ;;  %v117_v12 = vld [vmem:[%s1789_s0 + $0x10] sm:$0xff]  ;;  %vm626_vm4 = vcmask 1041408   ;;  %vm1047_vm6 = vcmask 27648  }
  0x24   :  { %553 = vmatpush1.bf16.msra.mxu1 %v1510_v61  ;;  %579 = vmatprep.subr.bf16.mxu0 %v1519_v62  ;;  %v649_v6 = vld [vmem:[%s1790_s1 + $0x8] sm:$0xff]  ;;  %v648_v8 = vld [vmem:[%s1790_s1] sm:$0xff]  ;;  %v125_v13 = vld [vmem:[%s1789_s0 + $0x50] sm:$0xff] }
  0x25   :  { %717 = vmatprep.subr.bf16.mxu1 %v1329_v20  ;;  %v657_v7 = vld [vmem:[%s1790_s1 + $0x48] sm:$0xff]  ;;  %v656_v9 = vld [vmem:[%s1790_s1 + $0x40] sm:$0xff]  ;;  %v118_v25 = vld [vmem:[%s1789_s0 + $0x18] sm:$0xff] }
  0x26   :  { %v126_v26 = vld [vmem:[%s1789_s0 + $0x58] sm:$0xff]  ;;  %v650_v28 = vld [vmem:[%s1790_s1 + $0x10] sm:$0xff]  ;;  %v661_v2 = vld [vmem:[%s1790_s1 + $0x68] sm:$0xff] }
  0x27   :  { %v658_v32 = vld [vmem:[%s1790_s1 + $0x50] sm:$0xff] }
  0x7d   :  { %v144_v63 = vpop.permute.xlu1 %143  ;;  %v134_v0 = vpop.permute.xlu0 %133 }
  0x7e   :  { %v171_v14 = vmul.f32 %v134_v0, %v115_v1  ;;  %v179_v15 = vmul.f32 %v134_v0, %v123_v3  ;;  %v664_v20 = vmul.f32 %v648_v8, %v134_v0  ;;  %v672_v24 = vmul.f32 %v656_v9, %v134_v0 }
  0x7f   :  { %v173_v33 = vmul.f32 %v144_v63, %v117_v12  ;;  %v181_v36 = vmul.f32 %v144_v63, %v125_v13  ;;  %v674_v12 = vmul.f32 %v658_v32, %v144_v63  ;;  %v120_v13 = vld [vmem:[%s1789_s0 + $0x28] sm:$0xff] }
  0x81   :  { %v149_v10 = vpop.permute.xlu1 %148  ;;  %v139_v11 = vpop.permute.xlu0 %138 }
  0x82   :  { %v172_v16 = vmul.f32 %v139_v11, %v116_v4  ;;  %v180_v17 = vmul.f32 %v139_v11, %v124_v5  ;;  %v665_v18 = vmul.f32 %v649_v6, %v139_v11  ;;  %v673_v19 = vmul.f32 %v657_v7, %v139_v11  ;;  %v119_v4 = vld [vmem:[%s1789_s0 + $0x20] sm:$0xff] }
  0x83   :  { %v127_v5 = vld [vmem:[%s1789_s0 + $0x60] sm:$0xff]  ;;  %v174_v6 = vmul.f32 %v149_v10, %v118_v25  ;;  %v182_v7 = vmul.f32 %v149_v10, %v126_v26  ;;  %v666_v11 = vmul.f32 %v650_v28, %v144_v63  ;;  %v122_v25 = vld [vmem:[%s1789_s0 + $0x38] sm:$0xf] }
  0x84   :  { %v187_v40 = vadd.f32 %v172_v16, %v171_v14  ;;  %v202_v44 = vadd.f32 %v180_v17, %v179_v15  ;;  %v680_v1 = vadd.f32 %v665_v18, %v664_v20  ;;  %v694_v3 = vadd.f32 %v673_v19, %v672_v24  ;;  %v128_v14 = vld [vmem:[%s1789_s0 + $0x68] sm:$0xff]  ;;  %v651_v15 = vld [vmem:[%s1790_s1 + $0x18] sm:$0xff] }
  0x85   :  { %v159_v48 = vpop.permute.xlu1 %158  ;;  %v154_v0 = vpop.permute.xlu0 %153  ;;  %v659_v16 = vld [vmem:[%s1790_s1 + $0x58] sm:$0xff] }
  0x86   :  { %v188_v8 = vadd.f32 %v187_v40, %v173_v33  ;;  %v203_v9 = vadd.f32 %v202_v44, %v181_v36  ;;  %v175_v19 = vmul.f32 %v154_v0, %v119_v4  ;;  %v183_v63 = vmul.f32 %v154_v0, %v127_v5  ;;  %v130_v26 = vld [vmem:[%s1789_s0 + $0x78] sm:$0xf]  ;;  %v121_v44 = vld [vmem:[%s1789_s0 + $0x30] sm:$0xff] }
  0x87   :  { %v681_v20 = vadd.f32 %v680_v1, %v666_v11  ;;  %v695_v24 = vadd.f32 %v694_v3, %v674_v12  ;;  %v176_v32 = vmul.f32 %v159_v48, %v120_v13  ;;  %v184_v33 = vmul.f32 %v159_v48, %v128_v14  ;;  %v129_v1 = vld [vmem:[%s1789_s0 + $0x70] sm:$0xff] }
  0x88   :  { %v189_v17 = vadd.f32 %v188_v8, %v174_v6  ;;  %v204_v18 = vadd.f32 %v203_v9, %v182_v7  ;;  %v667_v4 = vmul.f32 %v651_v15, %v149_v10  ;;  %v675_v5 = vmul.f32 %v659_v16, %v149_v10  ;;  %v652_v6 = vld [vmem:[%s1790_s1 + $0x20] sm:$0xff] }
  0x89   :  { %v169_v28 = vpop.permute.xlu1 %168  ;;  %v164_v3 = vpop.permute.xlu0 %163  ;;  %v660_v7 = vld [vmem:[%s1790_s1 + $0x60] sm:$0xff] }
  0x8a   :  { %v190_v36 = vadd.f32 %v189_v17, %v175_v19  ;;  %v205_v40 = vadd.f32 %v204_v18, %v183_v63  ;;  %v178_v8 = vmul.f32 %v169_v28, %v122_v25  ;;  %v186_v9 = vmul.f32 %v169_v28, %v130_v26  ;;  %v653_v63 = vld [vmem:[%s1790_s1 + $0x28] sm:$0xff] }
  0x8b   :  { %v682_v13 = vadd.f32 %v681_v20, %v667_v4  ;;  %v696_v14 = vadd.f32 %v695_v24, %v675_v5  ;;  %v177_v17 = vmul.f32 %v164_v3, %v121_v44  ;;  %v185_v18 = vmul.f32 %v164_v3, %v129_v1  ;;  %v654_v1 = vld [vmem:[%s1790_s1 + $0x30] sm:$0xff]  ;;  %v655_v5 = vld [vmem:[%s1790_s1 + $0x38] sm:$0xf] }
  0x8c   :  { %v191_v11 = vadd.f32 %v190_v36, %v176_v32  ;;  %v206_v12 = vadd.f32 %v205_v40, %v184_v33  ;;  %v668_v19 = vmul.f32 %v652_v6, %v154_v0  ;;  %v676_v15 = vmul.f32 %v660_v7, %v154_v0  ;;  %v662_v4 = vld [vmem:[%s1790_s1 + $0x70] sm:$0xff]  ;;  %v663_v6 = vld [vmem:[%s1790_s1 + $0x78] sm:$0xf] }
  0x8d   :  { %v194_v25 = vsel %vm193_vm2, %v178_v8, 0.0  ;;  %v208_v26 = vsel %vm193_vm2, %v186_v9, 0.0  ;;  %v669_v36 = vmul.f32 %v653_v63, %v159_v48  ;;  %v677_v0 = vmul.f32 %v661_v2, %v159_v48 }
  0x8e   :  { %v192_v10 = vadd.f32 %v191_v11, %v177_v17  ;;  %v207_v16 = vadd.f32 %v206_v12, %v185_v18  ;;  %v683_v20 = vadd.f32 %v682_v13, %v668_v19  ;;  %v697_v24 = vadd.f32 %v696_v14, %v676_v15 }
  0x8f   :  { %v670_v9 = vmul.f32 %v654_v1, %v164_v3  ;;  %v678_v11 = vmul.f32 %v662_v4, %v164_v3  ;;  %v671_v14 = vmul.f32 %v655_v5, %v169_v28  ;;  %v679_v17 = vmul.f32 %v663_v6, %v169_v28  ;;  %v1628_v1 = vld [vmem:[%s1792_s3 + $0x160] ss:$24 sps:$4 sm:$0xff]   ;;  %v1636_v6 = vld [vmem:[%s1792_s3 + $0x134] ss:$24 sps:$4 sm:$0xff]  }
  0x90   :  { %v195_v32 = vadd.f32 %v194_v25, %v192_v10  ;;  %v209_v33 = vadd.f32 %v208_v26, %v207_v16  ;;  %v684_v7 = vadd.f32 %v683_v20, %v669_v36  ;;  %v698_v2 = vadd.f32 %v697_v24, %v677_v0 }
  0x91   :  { %v686_v25 = vsel %vm193_vm2, %v671_v14, 0.0  ;;  %v700_v26 = vsel %vm193_vm2, %v679_v17, 0.0 }
  0x92   :  { %v196_v40 = vrot.slane %v195_v32, 4  ;;  %v210_v44 = vrot.slane %v209_v33, 4  ;;  %v685_v18 = vadd.f32 %v684_v7, %v670_v9  ;;  %v699_v19 = vadd.f32 %v698_v2, %v678_v11 }
  0x94   :  { %v197_v48 = vadd.f32 %v196_v40, %v195_v32  ;;  %v211_v8 = vadd.f32 %v210_v44, %v209_v33  ;;  %v687_v20 = vadd.f32 %v686_v25, %v685_v18  ;;  %v701_v24 = vadd.f32 %v700_v26, %v699_v19 }
  0x96   :  { %v198_v12 = vrot.slane %v197_v48, 2  ;;  %v212_v13 = vrot.slane %v211_v8, 2  ;;  %v688_v0 = vrot.slane %v687_v20, 4  ;;  %v702_v40 = vrot.slane %v701_v24, 4 }
  0x98   :  { %v199_v15 = vadd.f32 %v198_v12, %v197_v48  ;;  %v213_v10 = vadd.f32 %v212_v13, %v211_v8  ;;  %v689_v7 = vadd.f32 %v688_v0, %v687_v20  ;;  %v703_v2 = vadd.f32 %v702_v40, %v701_v24  ;;  %v1645_v48 = vld [vmem:[%s1792_s3 + $0x130] ss:$24 sps:$4 sm:$0xff]   ;;  %v1652_v8 = vld [vmem:[%s1792_s3 + $0x104] ss:$24 sps:$4 sm:$0xff]  }
  0x99   :  { %v1798_v12 = vmov 0  }
  0x9a   :  { %v200_v16 = vrot.slane %v199_v15, 1  ;;  %v214_v63 = vrot.slane %v213_v10, 1  ;;  %v690_v9 = vrot.slane %v689_v7, 2  ;;  %v704_v11 = vrot.slane %v703_v2, 2 }
  0x9c   :  { %v201_v32 = vadd.f32 %v200_v16, %v199_v15  ;;  %v215_v33 = vadd.f32 %v214_v63, %v213_v10  ;;  %v691_v13 = vadd.f32 %v690_v9, %v689_v7  ;;  %v705_v14 = vadd.f32 %v704_v11, %v703_v2 }
  0x9e   :  { %v216_v36 = vpack.c.bf16 %v201_v32, %v201_v32  ;;  %v217_v3 = vpack.c.bf16 %v215_v33, %v215_v33  ;;  %v692_v17 = vrot.slane %v691_v13, 1  ;;  %v706_v18 = vrot.slane %v705_v14, 1 }
  0xa0   :  { %v251_v28 = vunpack.c.l.b16 %v216_v36  ;;  %v252_v44 = vunpack.c.l.b16 %v217_v3  ;;  %v693_v19 = vadd.f32 %v692_v17, %v691_v13  ;;  %v707_v15 = vadd.f32 %v706_v18, %v705_v14 }
  0xa2   :  { %v254_v4 = vsel %vm253_vm3, %v252_v44, %v251_v28  ;;  %v708_v10 = vpack.c.bf16 %v693_v19, %v693_v19  ;;  %v709_v16 = vpack.c.bf16 %v707_v15, %v707_v15 }
  0xa3   :  { %v1631_v5 = vpack.c.b16 %v254_v4, %v254_v4 }
  0xa4   :  { %v712_v63 = vunpack.c.l.b16 %v708_v10  ;;  %v713_v25 = vunpack.c.l.b16 %v709_v16 }
  0xa5   :  { %530 = vmatmul.mubr.bf16.vlgmr.msra.gmra.mxu0 %v1631_v5  ;;  %571 = vmatmul.mubr.bf16.vlgmr.msra.gmra.mxu1 %v1631_v5 }
  0xa6   :  { %580 = vmatpush1.bf16.msra.mxu0 %v1628_v1  ;;  %718 = vmatpush1.bf16.msra.mxu1 %v1339_v22  ;;  %v1215_v22 = vld [vmem:[%s1792_s3 + $0x100] ss:$24 sps:$4 sm:$0xff]   ;;  %v714_v26 = vsel %vm253_vm3, %v713_v25, %v712_v63 }
  0xa7   :  { %581 = vmatprep.subr.bf16.mxu0 %v1636_v6  ;;  %719 = vmatprep.subr.bf16.mxu1 %v1353_v27  ;;  %v1220_v27 = vld [vmem:[%s1792_s3 + $0xd4] ss:$24 sps:$4 sm:$0xff]  }
  0xa8   :  { %611 = vmatprep.mubr.bf16.mxu0 %v1798_v12  ;;  %749 = vmatprep.mubr.bf16.mxu1 %v1798_v12 }
  0xaa   :  { %582 = vmatpush1.bf16.msra.mxu0 %v1645_v48  ;;  %720 = vmatpush1.bf16.msra.mxu1 %v1363_v30  ;;  %v1218_v30 = vld [vmem:[%s1792_s3 + $0xd0] ss:$24 sps:$4 sm:$0xff]  }
  0xab   :  { %583 = vmatprep.subr.bf16.mxu0 %v1652_v8  ;;  %721 = vmatprep.subr.bf16.mxu1 %v1377_v34  ;;  %v1223_v34 = vld [vmem:[%s1792_s3 + $0xa4] ss:$24 sps:$4 sm:$0xff]  }
  0xae   :  { %584 = vmatpush1.bf16.msra.mxu0 %v1215_v22  ;;  %722 = vmatpush1.bf16.msra.mxu1 %v1388_v37  ;;  %v1221_v37 = vld [vmem:[%s1792_s3 + $0xa0] ss:$24 sps:$4 sm:$0xff]  }
  0xaf   :  { %585 = vmatprep.subr.bf16.mxu0 %v1220_v27  ;;  %723 = vmatprep.subr.bf16.mxu1 %v1399_v39  ;;  %v1226_v39 = vld [vmem:[%s1792_s3 + $0x74] ss:$24 sps:$4 sm:$0xff]  }
  0xb2   :  { %586 = vmatpush1.bf16.msra.mxu0 %v1218_v30  ;;  %724 = vmatpush1.bf16.msra.mxu1 %v1411_v42  ;;  %v1224_v42 = vld [vmem:[%s1792_s3 + $0x70] ss:$24 sps:$4 sm:$0xff]  }
  0xb3   :  { %587 = vmatprep.subr.bf16.mxu0 %v1223_v34  ;;  %725 = vmatprep.subr.bf16.mxu1 %v1423_v45  ;;  %v1229_v45 = vld [vmem:[%s1792_s3 + $0x44] ss:$24 sps:$4 sm:$0xff]  }
  0xb6   :  { %588 = vmatpush1.bf16.msra.mxu0 %v1221_v37  ;;  %726 = vmatpush1.bf16.msra.mxu1 %v1433_v47  ;;  %v1227_v47 = vld [vmem:[%s1792_s3 + $0x40] ss:$24 sps:$4 sm:$0xff]  }
  0xb7   :  { %589 = vmatprep.subr.bf16.mxu0 %v1226_v39  ;;  %727 = vmatprep.subr.bf16.mxu1 %v1447_v50  ;;  %v1232_v50 = vld [vmem:[%s1792_s3 + $0x14] ss:$24 sps:$4 sm:$0xff]  }
  0xba   :  { %590 = vmatpush1.bf16.msra.mxu0 %v1224_v42  ;;  %728 = vmatpush1.bf16.msra.mxu1 %v1457_v52  ;;  %v1230_v52 = vld [vmem:[%s1792_s3 + $0x10] ss:$24 sps:$4 sm:$0xff]  }
  0xbb   :  { %591 = vmatprep.subr.bf16.mxu0 %v1229_v45  ;;  %729 = vmatprep.subr.bf16.mxu1 %v1471_v54  ;;  %v715_v54 = vpack.c.b16 %v714_v26, %v714_v26 }
  0xbe   :  { %592 = vmatpush1.bf16.msra.mxu0 %v1227_v47  ;;  %730 = vmatpush1.bf16.msra.mxu1 %v1481_v56  ;;  %v113_v56 = vstv %s1794_s5  ;;  %s1255_s5 = smov [#allocation4]  }
  0xbf   :  { %593 = vmatprep.subr.bf16.mxu0 %v1232_v50  ;;  %731 = vmatprep.subr.bf16.mxu1 %v1495_v58 }
  0xc2   :  { %594 = vmatpush1.bf16.msra.mxu0 %v1230_v52  ;;  %732 = vmatpush1.bf16.msra.mxu1 %v1505_v60 }
  0xc3   :  { %758 = vmatprep.subr.bf16.mxu0 %v1334_v21  ;;  %799 = vmatprep.subr.bf16.mxu1 %v1519_v62 }
  0xc5   :  { %612 = vmatmul.mubr.bf16.vlgmr.msra.gmra.mxu0 %v1631_v5  ;;  %750 = vmatmul.mubr.bf16.vlgmr.msra.gmra.mxu1 %v715_v54 }
  0xc6   :  { %759 = vmatpush1.bf16.msra.mxu0 %v1344_v23  ;;  %800 = vmatpush1.bf16.msra.mxu1 %v1628_v1 }
  0xc7   :  { %760 = vmatprep.subr.bf16.mxu0 %v1358_v29  ;;  %801 = vmatprep.subr.bf16.mxu1 %v1636_v6 }
  0xc8   :  { %790 = vmatprep.mubr.bf16.mxu0 %v1798_v12  ;;  %831 = vmatprep.mubr.bf16.mxu1 %v1798_v12 }
  0xca   :  { %761 = vmatpush1.bf16.msra.mxu0 %v1369_v31  ;;  %802 = vmatpush1.bf16.msra.mxu1 %v1645_v48 }
  0xcb   :  { %762 = vmatprep.subr.bf16.mxu0 %v1382_v35  ;;  %803 = vmatprep.subr.bf16.mxu1 %v1652_v8  ;;  %v109_v35 = vpop.permute.xlu0 %108 }
  0xce   :  { %763 = vmatpush1.bf16.msra.mxu0 %v1393_v38  ;;  %804 = vmatpush1.bf16.msra.mxu1 %v1215_v22  ;;  %v219_v38 = vlaneseq }
  0xcf   :  { %764 = vmatprep.subr.bf16.mxu0 %v1406_v41  ;;  %805 = vmatprep.subr.bf16.mxu1 %v1220_v27  ;;  %v105_v41 = vld [vmem:[%s1793_s4] sm:$0x3f] }
  0xd2   :  { %765 = vmatpush1.bf16.msra.mxu0 %v1417_v43  ;;  %806 = vmatpush1.bf16.msra.mxu1 %v1218_v30 }
  0xd3   :  { %766 = vmatprep.subr.bf16.mxu0 %v1428_v46  ;;  %807 = vmatprep.subr.bf16.mxu1 %v1223_v34 }
  0xd6   :  { %767 = vmatpush1.bf16.msra.mxu0 %v1440_v49  ;;  %808 = vmatpush1.bf16.msra.mxu1 %v1221_v37 }
  0xd7   :  { %768 = vmatprep.subr.bf16.mxu0 %v1452_v51  ;;  %809 = vmatprep.subr.bf16.mxu1 %v1226_v39 }
  0xda   :  { %769 = vmatpush1.bf16.msra.mxu0 %v1464_v53  ;;  %810 = vmatpush1.bf16.msra.mxu1 %v1224_v42  ;;  %v111_v53 = vmul.f32 %v109_v35, %v105_v41 }
  0xdb   :  { %770 = vmatprep.subr.bf16.mxu0 %v1476_v55  ;;  %811 = vmatprep.subr.bf16.mxu1 %v1229_v45  ;;  %v1733_v55 = vshrl.u32 %v219_v38, 7 }
  0xdd   :  { %v225_v58 = vsub.s32 1, %v1733_v55  ;;  %v229_v62 = vsub.s32 2, %v1733_v55  ;;  %v233_v36 = vsub.s32 3, %v1733_v55  ;;  %v237_v5 = vsub.s32 4, %v1733_v55 }
  0xde   :  { %771 = vmatpush1.bf16.msra.mxu0 %v1488_v57  ;;  %812 = vmatpush1.bf16.msra.mxu1 %v1227_v47  ;;  %v114_v57 = vadd.f32 %v113_v56, %v111_v53  ;;  %v241_v7 = vsub.s32 5, %v1733_v55 }
  0xdf   :  { %772 = vmatprep.subr.bf16.mxu0 %v1500_v59  ;;  %813 = vmatprep.subr.bf16.mxu1 %v1232_v50  ;;  %v221_v59 = vsub.s32 0, %v1733_v55 }
  0xe0   :  { %v226_v60 = vrot.slane %v114_v57, %v225_v58  ;;  %v230_v32 = vrot.slane %v114_v57, %v229_v62  ;;  %v234_v28 = vrot.slane %v114_v57, %v233_v36  ;;  %v238_v8 = vrot.slane %v114_v57, %v237_v5 }
  0xe1   :  { %v242_v27 = vrot.slane %v114_v57, %v241_v7 }
  0xe2   :  { %773 = vmatpush1.bf16.msra.mxu0 %v1510_v61  ;;  %814 = vmatpush1.bf16.msra.mxu1 %v1230_v52  ;;  %v222_v61 = vrot.slane %v114_v57, %v221_v59 }
  0xe5   :  { %791 = vmatmul.mubr.bf16.vlgmr.msra.gmra.mxu0 %v715_v54  ;;  %832 = vmatmul.mubr.bf16.vlgmr.msra.gmra.mxu1 %v715_v54 }
 0x165   :  { %v531_v21 = vpop.f32.mrf.mxu0  ;;  %v572_v23 = vpop.f32.mrf.mxu1 }
 0x166   :  { %v1743_v24 = vadd.f32 %v531_v21, %v222_v61  ;;  %v1750_v0 = vadd.f32 %v572_v23, %v230_v32 }
 0x167   :  { %v533_v29 = vpop.f32.mrf.mxu0  ;;  %v574_v31 = vpop.f32.mrf.mxu1 }
 0x168   :  { %v1741_v20 = vadd.f32 %v533_v29, %v226_v60  ;;  %v620_v3 = vmul.f32 %v1743_v24, %v1743_v24  ;;  %v622_v1 = vmul.f32 %v1750_v0, %v1750_v0  ;;  %v1756_v4 = vadd.f32 %v574_v31, %v234_v28 }
 0x169   :  { %v535_v43 = vpop.f32.mrf.mxu0  ;;  %v576_v46 = vpop.f32.mrf.mxu1 }
 0x16a   :  { %v621_v33 = vmul.f32 %v1741_v20, %v1741_v20  ;;  %v627_v44 = vsel %vm626_vm4, %v620_v3, 0.0  ;;  %v630_v2 = vsel %vm626_vm4, %v622_v1, 0.0  ;;  %v623_v48 = vmul.f32 %v1756_v4, %v1756_v4 }
 0x16b   :  { %v536_v49 = vpop.f32.mrf.mxu0  ;;  %v577_v51 = vpop.f32.mrf.mxu1 }
 0x16c   :  { %v628_v40 = vsel %vm626_vm4, %v621_v33, 0.0  ;;  %v632_v30 = vsel %vm626_vm4, %v623_v48, 0.0 }
 0x16d   :  { %v629_v6 = vadd.f32 %v628_v40, %v627_v44 }
 0x16f   :  { %v631_v12 = vadd.f32 %v630_v2, %v629_v6 }
 0x171   :  { %v633_v39 = vadd.f32 %v632_v30, %v631_v12 }
 0x185   :  { %v613_v9 = vpop.f32.mrf.mxu0  ;;  %v751_v11 = vpop.f32.mrf.mxu1 }
 0x186   :  { %v614_v22 = vadd.f32 %v613_v9, %v238_v8  ;;  %v752_v63 = vadd.f32 %v751_v11, %v222_v61 }
 0x187   :  { %v615_v13 = vpop.f32.mrf.mxu0  ;;  %v753_v14 = vpop.f32.mrf.mxu1 }
 0x188   :  { %v624_v34 = vmul.f32 %v614_v22, %v614_v22  ;;  %v616_v17 = vadd.f32 %v615_v13, %v242_v27  ;;  %v754_v50 = vadd.f32 %v753_v14, %v226_v60  ;;  %v840_v52 = vmul.f32 %v752_v63, %v752_v63 }
 0x189   :  { %v617_v18 = vpop.f32.mrf.mxu0  ;;  %v755_v37 = vpop.f32.mrf.mxu1 }
 0x18a   :  { %v625_v19 = vmul.f32 %v616_v17, %v616_v17  ;;  %v634_v15 = vsel %vm626_vm4, %v624_v34, 0.0  ;;  %v841_v25 = vmul.f32 %v754_v50, %v754_v50  ;;  %v846_v41 = vsel %vm626_vm4, %v840_v52, 0.0 }
 0x18b   :  { %v618_v42 = vpop.f32.mrf.mxu0  ;;  %v756_v45 = vpop.f32.mrf.mxu1  ;;  %v635_v10 = vadd.f32 %v634_v15, %v633_v39 }
 0x18c   :  { %v636_v16 = vsel %vm626_vm4, %v625_v19, 0.0  ;;  %v847_v21 = vsel %vm626_vm4, %v841_v25, 0.0 }
 0x18d   :  { %v637_v47 = vadd.f32 %v636_v16, %v635_v10  ;;  %v848_v51 = vadd.f32 %v847_v21, %v846_v41 }
 0x18f   :  { %638 = vadd.xlane.f32.xlu0 %v637_v47 }
 0x1a5   :  { %v792_v26 = vpop.f32.mrf.mxu0  ;;  %v833_v54 = vpop.f32.mrf.mxu1 }
 0x1a6   :  { %v793_v23 = vadd.f32 %v792_v26, %v230_v32  ;;  %v834_v29 = vadd.f32 %v833_v54, %v238_v8 }
 0x1a7   :  { %v794_v31 = vpop.f32.mrf.mxu0  ;;  %v835_v35 = vpop.f32.mrf.mxu1 }
 0x1a8   :  { %v842_v43 = vmul.f32 %v793_v23, %v793_v23  ;;  %v795_v46 = vadd.f32 %v794_v31, %v234_v28  ;;  %v836_v49 = vadd.f32 %v835_v35, %v242_v27  ;;  %v844_v58 = vmul.f32 %v834_v29, %v834_v29 }
 0x1a9   :  { %v796_v53 = vpop.f32.mrf.mxu0  ;;  %v837_v56 = vpop.f32.mrf.mxu1 }
 0x1aa   :  { %v849_v57 = vsel %vm626_vm4, %v842_v43, 0.0  ;;  %v843_v59 = vmul.f32 %v795_v46, %v795_v46  ;;  %v845_v33 = vmul.f32 %v836_v49, %v836_v49  ;;  %v853_v3 = vsel %vm626_vm4, %v844_v58, 0.0 }
 0x1ab   :  { %v850_v60 = vadd.f32 %v849_v57, %v848_v51  ;;  %v797_v61 = vpop.f32.mrf.mxu0  ;;  %v838_v62 = vpop.f32.mrf.mxu1 }
 0x1ac   :  { %v851_v32 = vsel %vm626_vm4, %v843_v59, 0.0  ;;  %v855_v28 = vsel %vm626_vm4, %v845_v33, 0.0 }
 0x1ad   :  { %v852_v36 = vadd.f32 %v851_v32, %v850_v60 }
 0x1af   :  { %v854_v40 = vadd.f32 %v853_v3, %v852_v36 }
 0x1b1   :  { %v856_v44 = vadd.f32 %v855_v28, %v854_v40 }
 0x1b3   :  { %857 = vadd.xlane.f32.xlu1 %v856_v44 }
 0x218   :  { %v639_v1 = vpop.xlane.xlu0 %638 }
 0x219   :  { %v640_v5 = vmax.f32 %v639_v1, 1e-24 }
 0x21b   :  { %1236 = vrsqrt.f32 %v640_v5 }
 0x228   :  { %v1237_v6 = vpop.eup %1236 }
 0x229   :  { %v642_v7 = vmul.f32 %v1237_v6, %v1743_v24  ;;  %v643_v2 = vmul.f32 %v1237_v6, %v1741_v20  ;;  %v644_v48 = vmul.f32 %v1237_v6, %v1750_v0  ;;  %v645_v8 = vmul.f32 %v1237_v6, %v1756_v4 }
 0x22a   :  { %v646_v9 = vmul.f32 %v1237_v6, %v614_v22  ;;  %v647_v11 = vmul.f32 %v1237_v6, %v616_v17 }
 0x22b   :  { %v874_v12 = vcombine.low %v644_v48, %v645_v8  ;;  %v873_v27 = vcombine.low %v642_v7, %v643_v2 }
 0x22c   :  { %v875_v13 = vcombine.low %v646_v9, %v647_v11 }
 0x22d   :  { %880 = vst [vmem:[#allocation2] sm:$0x33] %v874_v12  ;;  %879 = vst [vmem:[#allocation2 + $0x10] sm:$0x33] %v873_v27  ;;  %v1041_v27 = vand.u32 127, %v219_v38 }
 0x22e   :  { %881 = vst [vmem:[#allocation2 + $0x8] sm:$0x33] %v875_v13 }
 0x22f   :  { %vm1042_vm5 = vcmp.eq.s32.totalorder %v1733_v55, %v1041_v27 }
 0x23c   :  { %v858_v14 = vpop.xlane.xlu1 %857 }
 0x23d   :  { %v859_v30 = vmax.f32 %v858_v14, 1e-24 }
 0x23f   :  { %1238 = vrsqrt.f32 %v859_v30 }
 0x24c   :  { %v1239_v34 = vpop.eup %1238 }
 0x24d   :  { %v861_v18 = vmul.f32 %v1239_v34, %v752_v63  ;;  %v862_v24 = vmul.f32 %v1239_v34, %v754_v50  ;;  %v863_v37 = vmul.f32 %v1239_v34, %v793_v23  ;;  %v864_v20 = vmul.f32 %v1239_v34, %v795_v46 }
 0x24e   :  { %v865_v39 = vmul.f32 %v1239_v34, %v834_v29  ;;  %v866_v0 = vmul.f32 %v1239_v34, %v836_v49 }
 0x24f   :  { %v888_v19 = vcombine.low %v861_v18, %v862_v24  ;;  %v889_v4 = vcombine.low %v863_v37, %v864_v20  ;;  %v1052_v22 = vmul.f32 %v861_v18, %v642_v7  ;;  %v1053_v17 = vmul.f32 %v862_v24, %v643_v2 }
 0x250   :  { %v890_v15 = vcombine.low %v865_v39, %v866_v0  ;;  %v1054_v42 = vmul.f32 %v863_v37, %v644_v48  ;;  %v1055_v25 = vmul.f32 %v864_v20, %v645_v8  ;;  %v1056_v63 = vmul.f32 %v865_v39, %v646_v9 }
 0x251   :  { %v891_v45 = vrot.slane %v888_v19, 6  ;;  %v892_v10 = vrot.slane %v889_v4, 6  ;;  %v1058_v16 = vsel %vm626_vm4, %v1052_v22, 0.0  ;;  %v1059_v52 = vsel %vm626_vm4, %v1053_v17, 0.0 }
 0x252   :  { %v893_v47 = vrot.slane %v890_v15, 6  ;;  %v1060_v50 = vadd.f32 %v1059_v52, %v1058_v16  ;;  %v1061_v26 = vsel %vm626_vm4, %v1054_v42, 0.0  ;;  %v1057_v21 = vmul.f32 %v866_v0, %v647_v11 }
 0x253   :  { %897 = vst [vmem:[#allocation2 + $0x10] sm:$0xcc] %v891_v45  ;;  %898 = vst [vmem:[#allocation2] sm:$0xcc] %v892_v10  ;;  %v1063_v23 = vsel %vm626_vm4, %v1055_v25, 0.0  ;;  %v1065_v31 = vsel %vm626_vm4, %v1056_v63, 0.0 }
 0x254   :  { %899 = vst [vmem:[#allocation2 + $0x8] sm:$0xcc] %v893_v47  ;;  %v1062_v54 = vadd.f32 %v1061_v26, %v1060_v50  ;;  %v1067_v41 = vsel %vm626_vm4, %v1057_v21, 0.0 }
 0x256   :  { %v1064_v29 = vadd.f32 %v1063_v23, %v1062_v54 }
 0x258   :  { %v1066_v35 = vadd.f32 %v1065_v31, %v1064_v29 }
 0x25a   :  { %v900_v43 = vld [vmem:[#allocation2 + $0x10] sm:$0xff]  ;;  %v901_v46 = vld [vmem:[#allocation2] sm:$0xff]  ;;  %v1068_v49 = vadd.f32 %v1067_v41, %v1066_v35 }
 0x25b   :  { %v906_v51 = vcombine.high %v900_v43, %v900_v43  ;;  %v907_v53 = vcombine.high %v901_v46, %v901_v46  ;;  %v902_v56 = vld [vmem:[#allocation2 + $0x8] sm:$0xff]  ;;  %v912_v60 = vpack.c.bf16 %v900_v43, %v900_v43  ;;  %v914_v61 = vpack.c.bf16 %v901_v46, %v901_v46 }
 0x25c   :  { %v908_v57 = vcombine.high %v902_v56, %v902_v56  ;;  %1069 = vadd.xlane.f32.xlu1 %v1068_v49  ;;  %v916_v32 = vpack.c.bf16 %v902_v56, %v902_v56 }
 0x25d   :  { %v913_v58 = vpack.c.bf16 %v906_v51, %v906_v51  ;;  %v915_v59 = vpack.c.bf16 %v907_v53, %v907_v53 }
 0x25e   :  { %v917_v62 = vpack.c.bf16 %v908_v57, %v908_v57 }
 0x25f   :  { %932 = vmatprep.subr.bf16.mxu0 %v913_v58  ;;  %950 = vmatprep.mubr.bf16.mxu0 %v913_v58 }
 0x260   :  { %972 = vmatprep.subr.bf16.mxu1 %v915_v59  ;;  %990 = vmatprep.mubr.bf16.mxu1 %v915_v59 }
 0x261   :  { %933 = vmatpush1.bf16.xpose.msra.mxu0 %v912_v60  ;;  %973 = vmatpush1.bf16.xpose.msra.mxu1 %v914_v61 }
 0x262   :  { %1012 = vmatprep.subr.bf16.mxu0 %v917_v62 }
 0x268   :  { %951 = vmatmul.mubr.bf16.vlgmr.msra.gmra.mxu0 %v912_v60  ;;  %991 = vmatmul.mubr.bf16.vlgmr.msra.gmra.mxu1 %v914_v61 }
 0x269   :  { %1013 = vmatpush1.bf16.xpose.msra.mxu0 %v916_v32  ;;  %1030 = vmatprep.mubr.bf16.mxu0 %v917_v62 }
 0x270   :  { %1031 = vmatmul.mubr.bf16.vlgmr.msra.gmra.mxu0 %v916_v32 }
 0x2e5   :  { %v1070_v24 = vpop.xlane.xlu1 %1069 }
 0x2e6   :  { %v1081_v20 = vsel %vm626_vm4, %v1070_v24, 0.0 }
 0x2e7   :  { %v1082_v39 = vrot.slane %v1081_v20, 4 }
 0x2e9   :  { %v1083_v0 = vadd.f32 %v1082_v39, %v1081_v20 }
 0x2eb   :  { %v1084_v19 = vrot.slane %v1083_v0, 2 }
 0x2ed   :  { %v1085_v38 = vadd.f32 %v1084_v19, %v1083_v0 }
 0x2ef   :  { %v1086_v42 = vrot.slane %v1085_v38, 1 }
 0x2f1   :  { %v1087_v16 = vadd.f32 %v1086_v42, %v1085_v38 }
 0x2f3   :  { %v1088_v52 = vmul.f32 20.0, %v1087_v16 }
 0x328   :  { %v952_v33 = vpop.f32.mrf.mxu0  ;;  %v992_v36 = vpop.f32.mrf.mxu1 }
 0x329   :  { %v993_v6 = vadd.f32 %v992_v36, %v952_v33 }
 0x32a   :  { %v954_v3 = vpop.f32.mrf.mxu0  ;;  %v994_v40 = vpop.f32.mrf.mxu1 }
 0x32c   :  { %v955_v28 = vpop.f32.mrf.mxu0  ;;  %v995_v44 = vpop.f32.mrf.mxu1 }
 0x32e   :  { %v956_v1 = vpop.f32.mrf.mxu0  ;;  %v996_v5 = vpop.f32.mrf.mxu1 }
 0x330   :  { %v1032_v7 = vpop.f32.mrf.mxu0 }
 0x331   :  { %v1033_v2 = vadd.f32 %v1032_v7, %v993_v6 }
 0x332   :  { %v1034_v48 = vpop.f32.mrf.mxu0 }
 0x333   :  { %v1043_v8 = vmul.f32 10.0, %v1033_v2 }
 0x334   :  { %v1035_v9 = vpop.f32.mrf.mxu0 }
 0x335   :  { %v1044_v11 = vmul.f32 1.442695, %v1043_v8 }
 0x336   :  { %v1036_v12 = vpop.f32.mrf.mxu0 }
 0x337   :  { %1240 = vpow2.f32 %v1044_v11 }
 0x344   :  { %v1241_v13 = vpop.eup %1240 }
 0x345   :  { %v1046_v14 = vsel %vm1042_vm5, 0.0, %v1241_v13 }
 0x346   :  { %v1048_v30 = vsel %vm1047_vm6, %v1046_v14, 0.0 }
 0x347   :  { %1049 = vadd.xlane.f32.xlu0 %v1048_v30 }
 0x3d0   :  { %v1050_v34 = vpop.xlane.xlu0 %1049 }
 0x3d1   :  { %v1051_v18 = vmax.f32 %v1050_v34, 1e-06 }
 0x3d3   :  { %v1071_v37 = vadd.f32 1e-06, %v1051_v18 }
 0x3d5   :  { %1242 = vlog2.f32 %v1071_v37 }
 0x3e2   :  { %v1243_v4 = vpop.eup %1242 }
 0x3e3   :  { %v1073_v22 = vmul.f32 0.6931472, %v1243_v4 }
 0x3e5   :  { %v1074_v55 = vsel %vm193_vm2, %v1073_v22, 0.0 }
 0x3e6   :  { %v1075_v17 = vrot.slane %v1074_v55, 4 }
 0x3e8   :  { %v1076_v15 = vadd.f32 %v1075_v17, %v1074_v55 }
 0x3ea   :  { %v1077_v45 = vrot.slane %v1076_v15, 2 }
 0x3ec   :  { %v1078_v10 = vadd.f32 %v1077_v45, %v1076_v15 }
 0x3ee   :  { %v1079_v47 = vrot.slane %v1078_v10, 1 }
 0x3f0   :  { %v1080_v25 = vadd.f32 %v1079_v47, %v1078_v10 }
 0x3f2   :  { %v1089_v50 = vsub.f32 %v1080_v25, %v1088_v52 }
 0x3f4   :  { %v1090_v63 = vmul.f32 0.25, %v1089_v50 }
 0x3f6   :  { %1155 = vpush %v1090_v63 }
 0x427   :  { %s1156_s4 = spop %1155 }
 0x428   :  { %1093 = sst [smem:[#allocation4]] %s1156_s4 }
 0x429   :  { %1101 = dma.smem_to_hbm %s1255_s5, 16, %s1795_s6, [#allocation5]  }
 0x42a   :  { %1252 = dma.done.wait [#allocation5], 16  }
 0x42b   :  { %1253 = vsyncadd [#allocation5], 4294967280 }
 0x42c   :  { %1105 = sfence }
 0x42d   :  { %1106 = vsyncpa [#allocation5], 1 }

</bundles_post_ra>
